<compile_context>
chip_gen: v7x
topology: tpu7x:2x2x1
jax: 0.10.0
libtpu: 0.0.40
codegen_flags: <defaults>
</compile_context>

<pallas_src>
import functools

import jax
import jax.numpy as jnp
from jax import lax
from jax.experimental import pallas as pl
from jax.experimental.pallas import tpu as pltpu

LANE = 128
SUBLANE = 8
_TARGET_BLOCK_BYTES = 2 * 1024 * 1024   # ~2 MiB per input block
_CHUNK_ROWS = 512                       # inner compute chunk (256 KiB f32/operand)


def _rmse_kernel(x_ref, y_ref, out_ref, *, block_rows, chunk_rows, rows_valid,
                 blocks_total, blocks_per_split, needs_mask, has_dup):
    i = pl.program_id(0)            # split axis: both TCs on v7x ("parallel")
    j = pl.program_id(1)            # streaming axis ("arbitrary")
    blk = i * blocks_per_split + j  # linear block id (un-clamped)

    # Zero this split's resident output-accumulator block on its first step.
    @pl.when(j == 0)
    def _():
        out_ref[...] = jnp.zeros_like(out_ref)

    def accum_chunk(r0, mask_rows):
        xs = x_ref[pl.ds(r0, chunk_rows), :].astype(jnp.float32)
        ys = y_ref[pl.ds(r0, chunk_rows), :].astype(jnp.float32)
        d = xs - ys
        dd = d * d
        if mask_rows:
            # Final (partial) block only: the DMA overhang past the valid rows
            # holds unspecified values; select (not multiply) discards them.
            row = (lax.broadcasted_iota(jnp.int32, dd.shape, 0)
                   + blk * block_rows + r0)
            dd = jnp.where(row < rows_valid, dd, 0.0)
        # Sublane-only reshape + per-vreg adds into the (8, 128) accumulator;
        # no lane crossing, no large materialized temporary.
        out_ref[...] += dd.reshape(chunk_rows // SUBLANE, SUBLANE, LANE).sum(axis=0)

    n_chunks = block_rows // chunk_rows

    def accum(mask_rows):
        if n_chunks == 1:
            accum_chunk(0, mask_rows)
        else:
            def body(k, carry):
                accum_chunk(pl.multiple_of(k * chunk_rows, chunk_rows), mask_rows)
                return carry
            lax.fori_loop(0, n_chunks, body, 0)

    if needs_mask:
        # Hot path stays mask-free; iota/compare/select only on the last block.
        @pl.when(blk < blocks_total - 1)
        def _():
            accum(False)

        @pl.when(blk == blocks_total - 1)
        def _():
            accum(True)
    elif has_dup:
        # Odd block count: the trailing duplicate slot (clamped DMA) is skipped
        # so nothing is double counted.
        @pl.when(blk < blocks_total)
        def _():
            accum(False)
    else:
        accum(False)


def rmse_loss(output, target, *, block_rows=None):
    assert output.shape == target.shape, "output/target must have same shape"
    n = output.size

    x_flat = output.reshape(-1)
    y_flat = target.reshape(-1)

    # Largest prefix whose 128-lane row count is a multiple of 8: processed by
    # the kernel via a free reshape (no padding, no dtype-cast copy in HBM).
    rows_main = (n // (SUBLANE * LANE)) * SUBLANE
    n_main = rows_main * LANE
    rem = n - n_main

    if rows_main == 0:
        # Tiny input (< 1024 elements): not worth a kernel launch.
        d = x_flat.astype(jnp.float32) - y_flat.astype(jnp.float32)
        return jnp.sqrt(jnp.sum(d * d) / n)

    x2d = x_flat[:n_main].reshape(rows_main, LANE)
    y2d = y_flat[:n_main].reshape(rows_main, LANE)

    x_itemsize = output.dtype.itemsize
    y_itemsize = target.dtype.itemsize
    if block_rows is None:
        # ~2 MiB per input block; bigger rows for narrower dtypes (same bytes).
        block_rows = max(_CHUNK_ROWS,
                         (_TARGET_BLOCK_BYTES // (LANE * x_itemsize)) // 32 * 32)
    assert block_rows % SUBLANE == 0

    br = rows_main if rows_main <= block_rows else block_rows
    blocks_total = pl.cdiv(rows_main, br)
    needs_mask = (rows_main % br) != 0

    # Two-way split across the (possible) two TensorCores; harmless elsewhere.
    nsplit = 2 if blocks_total >= 2 else 1
    blocks_per_split = pl.cdiv(blocks_total, nsplit)
    has_dup = nsplit * blocks_per_split > blocks_total

    chunk_rows = _CHUNK_ROWS if br % _CHUNK_ROWS == 0 else br

    if has_dup:
        def in_map(i, j):
            # Clamp the duplicate trailing slot onto a valid block (its compute
            # is skipped in the kernel), so the DMA never walks off the array.
            return (jnp.minimum(i * blocks_per_split + j, blocks_total - 1), 0)
    else:
        def in_map(i, j):
            return (i * blocks_per_split + j, 0)

    kernel = functools.partial(
        _rmse_kernel, block_rows=br, chunk_rows=chunk_rows, rows_valid=rows_main,
        blocks_total=blocks_total, blocks_per_split=blocks_per_split,
        needs_mask=needs_mask, has_dup=has_dup)

    cost = pl.CostEstimate(
        flops=3 * n_main,
        transcendentals=0,
        bytes_accessed=n_main * (x_itemsize + y_itemsize)
                       + nsplit * SUBLANE * LANE * 4)

    partials = pl.pallas_call(
        kernel,
        out_shape=jax.ShapeDtypeStruct((nsplit * SUBLANE, LANE), jnp.float32),
        grid_spec=pltpu.PrefetchScalarGridSpec(
            num_scalar_prefetch=0,
            grid=(nsplit, blocks_per_split),
            in_specs=[
                pl.BlockSpec((br, LANE), in_map),
                pl.BlockSpec((br, LANE), in_map),
            ],
            # Per-split accumulator block: index depends only on the parallel
            # axis, so it stays resident in VMEM across the streaming axis.
            out_specs=pl.BlockSpec((SUBLANE, LANE), lambda i, j: (i, 0)),
        ),
        compiler_params=pltpu.CompilerParams(
            dimension_semantics=("parallel", "arbitrary"),
        ),
        cost_estimate=cost,
    )(x2d, y2d)

    # Tiny combine + finalize in plain JAX (fuses under jit).
    total = jnp.sum(partials)
    if rem:
        # Ragged tail (< 1024 elements): plain JAX; avoids padding/copying the
        # whole array just to make the kernel shapes line up.
        dt = (x_flat[n_main:].astype(jnp.float32)
              - y_flat[n_main:].astype(jnp.float32))
        total = total + jnp.sum(dt * dt)
    return jnp.sqrt(total / n)


if __name__ == "__main__":
    key = jax.random.PRNGKey(0)
    k1, k2, k3, k4 = jax.random.split(key, 4)

    rmse_fn = jax.jit(rmse_loss)

    # Small NCHW-shaped inputs, matching a typical conv-output / target pair.
    output = jax.random.normal(k1, (2, 4, 16, 16), dtype=jnp.float32)
    target = jax.random.normal(k2, (2, 4, 16, 16), dtype=jnp.float32)
    rmse = jax.block_until_ready(rmse_fn(output, target))
    ref = jnp.sqrt(jnp.mean((output - target) ** 2))
    assert jnp.allclose(rmse, ref, rtol=1e-5, atol=1e-6), (rmse, ref)

    # Larger input exercising the two-way split / multi-block streaming path.
    big_o = jax.random.normal(k3, (16, 16, 64, 64), dtype=jnp.float32)
    big_t = jax.random.normal(k4, (16, 16, 64, 64), dtype=jnp.float32)
    rmse_big = jax.block_until_ready(rmse_fn(big_o, big_t))
    ref_big = jnp.sqrt(jnp.mean((big_o - big_t) ** 2))
    assert jnp.allclose(rmse_big, ref_big, rtol=1e-5, atol=1e-6), (rmse_big, ref_big)

    # Ragged shape + tiny forced block size: exercises the masked last block,
    # the clamped duplicate slot, and the plain-JAX tail path.
    rag_o = jax.random.normal(k1, (3, 5, 7, 11, 13), dtype=jnp.float32)
    rag_t = jax.random.normal(k2, (3, 5, 7, 11, 13), dtype=jnp.float32)
    rmse_rag = jax.block_until_ready(
        jax.jit(functools.partial(rmse_loss, block_rows=24))(rag_o, rag_t))
    ref_rag = jnp.sqrt(jnp.mean((rag_o - rag_t) ** 2))
    assert jnp.allclose(rmse_rag, ref_rag, rtol=1e-5, atol=1e-6), (rmse_rag, ref_rag)

    print("KERNEL_OK")
</pallas_src>

<mosaic_0001>
module attributes {stable_mosaic.version = 11 : i64} {
  func.func @_rmse_kernel(%arg0: i32, %arg1: i32, %arg2: memref<16x128xf32, #tpu.memory_space<vmem>>, %arg3: memref<16x128xf32, #tpu.memory_space<vmem>>, %arg4: memref<8x128xf32, #tpu.memory_space<vmem>>) attributes {dimension_semantics = [#tpu.dimension_semantics<parallel>, #tpu.dimension_semantics<arbitrary>], iteration_bounds = array<i64: 1, 1>, scalar_prefetch = 0 : i64, scratch_operands = 0 : i64, tpu.core_type = #tpu.core_type<tc>, window_params = [{transform_indices = @transform_0, window_bounds = array<i64: 16, 128>}, {transform_indices = @transform_1, window_bounds = array<i64: 16, 128>}, {transform_indices = @transform_2, window_bounds = array<i64: 8, 128>}]} {
    %c0_i32 = arith.constant 0 : i32
    %0 = arith.cmpi eq, %arg1, %c0_i32 : i32
    %1 = arith.extui %0 : i1 to i32
    %c0_i32_0 = arith.constant 0 : i32
    %2 = arith.cmpi ne, %1, %c0_i32_0 : i32
    scf.if %2 {
      %cst_8 = arith.constant 0.000000e+00 : f32
      %12 = vector.broadcast %cst_8 : f32 to vector<8x128xf32>
      %c0_9 = arith.constant 0 : index
      %c0_10 = arith.constant 0 : index
      %13 = vector.load %arg4[%c0_9, %c0_10] : memref<8x128xf32, #tpu.memory_space<vmem>>, vector<8x128xf32>
      tpu.vector_store %arg4[%c0_9, %c0_10], %12 {strides = array<i32>} : memref<8x128xf32, #tpu.memory_space<vmem>>, vector<8x128xf32>,
    } else {
    }
    %c0 = arith.constant 0 : index
    %c0_1 = arith.constant 0 : index
    %3 = vector.load %arg2[%c0, %c0_1] : memref<16x128xf32, #tpu.memory_space<vmem>>, vector<16x128xf32>
    %c0_2 = arith.constant 0 : index
    %c0_3 = arith.constant 0 : index
    %4 = vector.load %arg3[%c0_2, %c0_3] : memref<16x128xf32, #tpu.memory_space<vmem>>, vector<16x128xf32>
    %5 = arith.subf %3, %4 : vector<16x128xf32>
    %6 = arith.mulf %5, %5 : vector<16x128xf32>
    %c0_4 = arith.constant 0 : index
    %c0_5 = arith.constant 0 : index
    %7 = vector.load %arg4[%c0_4, %c0_5] : memref<8x128xf32, #tpu.memory_space<vmem>>, vector<8x128xf32>
    %8 = vector.shape_cast %6 : vector<16x128xf32> to vector<2x8x128xf32>
    %cst = arith.constant dense<0.000000e+00> : vector<8x128xf32>
    %9 = vector.multi_reduction <add>, %8, %cst [0] : vector<2x8x128xf32> to vector<8x128xf32>
    %10 = arith.addf %7, %9 : vector<8x128xf32>
    %c0_6 = arith.constant 0 : index
    %c0_7 = arith.constant 0 : index
    %11 = vector.load %arg4[%c0_6, %c0_7] : memref<8x128xf32, #tpu.memory_space<vmem>>, vector<8x128xf32>
    tpu.vector_store %arg4[%c0_6, %c0_7], %10 {strides = array<i32>} : memref<8x128xf32, #tpu.memory_space<vmem>>, vector<8x128xf32>,
    return
  }
  func.func @transform_0(%arg0: i32, %arg1: i32) -> (i32, i32) {
    %c1_i32 = arith.constant 1 : i32
    %0 = arith.muli %arg0, %c1_i32 : i32
    %1 = arith.addi %0, %arg1 : i32
    %c0_i32 = arith.constant 0 : i32
    %c0_i32_0 = arith.constant 0 : i32
    return %1, %c0_i32 : i32, i32
  }
  func.func @transform_1(%arg0: i32, %arg1: i32) -> (i32, i32) {
    %c1_i32 = arith.constant 1 : i32
    %0 = arith.muli %arg0, %c1_i32 : i32
    %1 = arith.addi %0, %arg1 : i32
    %c0_i32 = arith.constant 0 : i32
    %c0_i32_0 = arith.constant 0 : i32
    return %1, %c0_i32 : i32, i32
  }
  func.func @transform_2(%arg0: i32, %arg1: i32) -> (i32, i32) {
    %c0_i32 = arith.constant 0 : i32
    %c0_i32_0 = arith.constant 0 : i32
    return %arg0, %c0_i32 : i32, i32
  }
}

</mosaic_0001>

<bundles_post_ra>
// kernel: rmse_loss.1
= control target key start
LH: loop header
LB: loop body
LE: loop exit
PB: predicated region body
PF: predicated region fallthrough
CT: control target
= control target key end

     0   :  { %s119_s0 = inlined_call_operand.vmem [shape: f32[16,128], index: 0, kind: input, shape index: {}]   ;;  %s120_s1 = inlined_call_operand.vmem [shape: f32[16,128], index: 1, kind: input, shape index: {}]   ;;  %s121_s2 = inlined_call_operand.vmem [shape: f32[8,128], index: 2, kind: output, shape index: {}]  }
   0x1   :  { %v60_v0 = vld [vmem:[%s119_s0] sm:$0xff]  ;;  %v61_v1 = vld [vmem:[%s119_s0 + $0x8] sm:$0xff] }
   0x2   :  { %v62_v2 = vld [vmem:[%s120_s1] sm:$0xff]  ;;  %v63_v3 = vld [vmem:[%s120_s1 + $0x8] sm:$0xff] }
   0x3   :  { %v64_v4 = vsub.f32 %v60_v0, %v62_v2  ;;  %v65_v5 = vsub.f32 %v61_v1, %v63_v3 }
   0x5   :  { %v66_v6 = vmul.f32 %v64_v4, %v64_v4  ;;  %v67_v7 = vmul.f32 %v65_v5, %v65_v5 }
   0x7   :  { %v69_v8 = vadd.f32 %v67_v7, %v66_v6 }
   0x9   :  { %71 = vst [vmem:[%s121_s2] sm:$0xff] %v69_v8 }

</bundles_post_ra>
